<compile_context>
chip_gen: v5e
topology: v5e:2x2
jax: 0.10.0
libtpu: 0.0.40
codegen_flags: <defaults>
</compile_context>

<pallas_src>
import functools

import jax
import jax.numpy as jnp
from jax.experimental import pallas as pl
from jax.experimental.pallas import tpu as pltpu


def _xent_reduce_kernel(*refs, m_rows, tm, has_mask, ragged):
    """Per row-tile: loss = lse*sum(t) - sum(t*(x-max)); emit partial sums.

    Output is a lane-dense (8, 128) tile per grid step:
      sublane 0 -> sum(loss [* mask]) for this tile
      sublane 1 -> sum(mask) for this tile (only when has_mask)
    """
    if has_mask:
        logits_ref, target_ref, mask_ref, partial_ref = refs
    else:
        logits_ref, target_ref, partial_ref = refs
        mask_ref = None

    x = logits_ref[...].astype(jnp.float32)               # (tm, C)
    t = target_ref[...].astype(jnp.float32)               # (tm, C)

    x_max = jnp.max(x, axis=-1, keepdims=True)
    shifted = x - x_max
    lse = jnp.log(jnp.sum(jnp.exp(shifted), axis=-1, keepdims=True))
    t_sum = jnp.sum(t, axis=-1, keepdims=True)
    tx_sum = jnp.sum(t * shifted, axis=-1, keepdims=True)
    loss = lse * t_sum - tx_sum                            # (tm, 1)

    if has_mask:
        m = mask_ref[...].astype(jnp.float32)              # (tm, 1)
        loss = loss * m
    else:
        m = None

    if ragged:
        # Zero contributions of rows in the ragged final tile that lie past
        # the real row count (discards any garbage/NaN loaded there).
        i = pl.program_id(0)
        row = i * tm + jax.lax.broadcasted_iota(jnp.int32, (tm, 1), 0)
        valid = row < m_rows
        loss = jnp.where(valid, loss, 0.0)
        if has_mask:
            m = jnp.where(valid, m, 0.0)

    loss_sum = jnp.sum(loss)
    sub = jax.lax.broadcasted_iota(jnp.int32, (8, 128), 0)
    if has_mask:
        mask_sum = jnp.sum(m)
        partial_ref[...] = jnp.where(sub == 0, loss_sum,
                                     jnp.where(sub == 1, mask_sum, 0.0))
    else:
        partial_ref[...] = jnp.where(sub == 0, loss_sum, 0.0)


def _xent_perrow_kernel(logits_ref, target_ref, loss_ref):
    """average='none' variant: only the per-row loss, no reductions."""
    x = logits_ref[...].astype(jnp.float32)                # (tm, C)
    t = target_ref[...].astype(jnp.float32)                # (tm, C)

    x_max = jnp.max(x, axis=-1, keepdims=True)
    shifted = x - x_max
    lse = jnp.log(jnp.sum(jnp.exp(shifted), axis=-1, keepdims=True))
    loss_ref[...] = (lse * jnp.sum(t, axis=-1, keepdims=True)
                     - jnp.sum(t * shifted, axis=-1, keepdims=True))


def _choose_tm(m_rows, c, in_itemsize, budget_bytes=8 * 1024 * 1024, cap=1024):
    """Largest row tile whose double-buffered input blocks fit the budget.

    VMEM cost of the pipelined inputs ~= 2 buffers * tm * C * (sum itemsizes).
    """
    tm = budget_bytes // max(1, 2 * c * in_itemsize)
    tm = max(8, min(cap, (tm // 8) * 8))
    # Keep block_shape <= array shape; ragged final tiles handled in-kernel.
    if m_rows >= 8:
        tm = min(tm, (m_rows // 8) * 8)
    return tm


def cross_entropy_loss_with_logits(logits, target, mask=None, *,
                                   dim=-1, average='valid', tm=None):
    """Pallas implementation of jactorch CrossEntropyLossWithLogits.forward."""
    ndim = logits.ndim
    dim = dim % ndim

    # Move the softmax axis last only if needed (a transpose is a full extra
    # HBM read+write of both big arrays on a bandwidth-bound op).
    if dim != ndim - 1:
        perm = tuple(i for i in range(ndim) if i != dim) + (dim,)
        lg = jnp.transpose(logits, perm)
        tg = jnp.transpose(target, perm)
    else:
        lg, tg = logits, target

    batch_shape = lg.shape[:-1]
    C = lg.shape[-1]
    M = 1
    for s in batch_shape:
        M *= s
    lg = lg.reshape(M, C)
    tg = tg.reshape(M, C)

    has_mask = mask is not None
    mk = mask.reshape(M, 1).astype(jnp.float32) if has_mask else None

    # Tiny-M fallback only: pad rows up to 8 to satisfy the sublane rule.
    # (Never pads the common / large-M case, so no extra HBM traffic there.)
    m_rows_padded = M
    if M < 8:
        pad = 8 - M
        lg = jnp.pad(lg, ((0, pad), (0, 0)))
        tg = jnp.pad(tg, ((0, pad), (0, 0)))
        if has_mask:
            mk = jnp.pad(mk, ((0, pad), (0, 0)))
        m_rows_padded = 8

    if tm is None:
        in_isz = lg.dtype.itemsize + tg.dtype.itemsize
        tm = _choose_tm(m_rows_padded, C, in_isz)
    else:
        tm = max(8, (int(tm) // 8) * 8)

    nblocks = pl.cdiv(m_rows_padded, tm)
    ragged = (m_rows_padded % tm) != 0
    cparams = pltpu.CompilerParams(
        dimension_semantics=("parallel",),
        vmem_limit_bytes=32 * 1024 * 1024)

    if average == 'none':
        per_row = pl.pallas_call(
            _xent_perrow_kernel,
            out_shape=jax.ShapeDtypeStruct((m_rows_padded, 1), jnp.float32),
            grid_spec=pltpu.PrefetchScalarGridSpec(
                num_scalar_prefetch=0,
                grid=(nblocks,),
                in_specs=[pl.BlockSpec((tm, C), lambda i: (i, 0)),
                          pl.BlockSpec((tm, C), lambda i: (i, 0))],
                out_specs=pl.BlockSpec((tm, 1), lambda i: (i, 0))),
            compiler_params=cparams,
        )(lg, tg)
        return per_row[:M, 0].reshape(batch_shape)

    kernel = functools.partial(_xent_reduce_kernel, m_rows=M, tm=tm,
                               has_mask=has_mask, ragged=ragged)
    in_specs = [pl.BlockSpec((tm, C), lambda i: (i, 0)),
                pl.BlockSpec((tm, C), lambda i: (i, 0))]
    args = [lg, tg]
    if has_mask:
        in_specs.append(pl.BlockSpec((tm, 1), lambda i: (i, 0)))
        args.append(mk)

    partials = pl.pallas_call(
        kernel,
        out_shape=jax.ShapeDtypeStruct((nblocks * 8, 128), jnp.float32),
        grid_spec=pltpu.PrefetchScalarGridSpec(
            num_scalar_prefetch=0,
            grid=(nblocks,),
            in_specs=in_specs,
            out_specs=pl.BlockSpec((8, 128), lambda i: (i, 0))),
        compiler_params=cparams,
    )(*args)

    partials = partials.reshape(nblocks, 8, 128)
    loss_sum = jnp.sum(partials[:, 0, 0])

    if (not has_mask) or average == 'all':
        return loss_sum / jnp.float32(M)
    if average == 'valid':
        mask_sum = jnp.sum(partials[:, 1, 0])
        return loss_sum / jnp.maximum(mask_sum, jnp.float32(0.1))
    raise ValueError('Unknown average method: {}.'.format(average))


def _ref_forward(logits, target, mask=None, dim=-1, average='valid'):
    logp = jax.nn.log_softmax(logits.astype(jnp.float32), axis=dim)
    loss = -jnp.sum(target.astype(jnp.float32) * logp, axis=dim)
    if average == 'none':
        return loss
    if mask is not None:
        loss = loss * mask
        if average == 'all':
            return loss.mean()
        return loss.sum() / jnp.maximum(mask.sum(), 0.1)
    return loss.mean()


if __name__ == "__main__":
    key = jax.random.PRNGKey(0)
    k1, k2, k3 = jax.random.split(key, 3)

    B, N, C = 2, 8, 32  # logits over C classes along dim=-1
    logits = jax.random.normal(k1, (B, N, C), dtype=jnp.float32)
    target = jax.nn.softmax(jax.random.normal(k2, (B, N, C), dtype=jnp.float32),
                            axis=-1)                # soft target distribution
    mask = (jax.random.uniform(k3, (B, N)) > 0.3).astype(jnp.float32)

    # average='valid' with mask
    out = jax.block_until_ready(
        cross_entropy_loss_with_logits(logits, target, mask,
                                       dim=-1, average='valid'))
    ref = _ref_forward(logits, target, mask, dim=-1, average='valid')
    assert jnp.allclose(out, ref, rtol=1e-5, atol=1e-5), (out, ref)

    # mask=None path (falls back to loss.mean(), no mask stream in-kernel)
    out2 = jax.block_until_ready(
        cross_entropy_loss_with_logits(logits, target, None,
                                       dim=-1, average='valid'))
    ref2 = _ref_forward(logits, target, None, dim=-1, average='valid')
    assert jnp.allclose(out2, ref2, rtol=1e-5, atol=1e-5), (out2, ref2)

    # average='all' with mask
    out3 = jax.block_until_ready(
        cross_entropy_loss_with_logits(logits, target, mask,
                                       dim=-1, average='all'))
    ref3 = _ref_forward(logits, target, mask, dim=-1, average='all')
    assert jnp.allclose(out3, ref3, rtol=1e-5, atol=1e-5), (out3, ref3)

    # average='none' (unreduced per-element loss)
    out4 = jax.block_until_ready(
        cross_entropy_loss_with_logits(logits, target, mask,
                                       dim=-1, average='none'))
    ref4 = _ref_forward(logits, target, mask, dim=-1, average='none')
    assert jnp.allclose(out4, ref4, rtol=1e-5, atol=1e-5)

    # softmax along a non-last axis (exercise the transpose path)
    out5 = jax.block_until_ready(
        cross_entropy_loss_with_logits(
            jnp.transpose(logits, (0, 2, 1)), jnp.transpose(target, (0, 2, 1)),
            mask, dim=1, average='valid'))
    assert jnp.allclose(out5, ref, rtol=1e-5, atol=1e-5), (out5, ref)

    print("KERNEL_OK")
</pallas_src>

<mosaic_0001>
module attributes {stable_mosaic.version = 11 : i64} {
  func.func @_xent_reduce_kernel(%arg0: i32, %arg1: memref<16x32xf32, #tpu.memory_space<vmem>>, %arg2: memref<16x32xf32, #tpu.memory_space<vmem>>, %arg3: memref<16x1xf32, #tpu.memory_space<vmem>>, %arg4: memref<8x128xf32, #tpu.memory_space<vmem>>) attributes {dimension_semantics = [#tpu.dimension_semantics<parallel>], iteration_bounds = array<i64: 1>, scalar_prefetch = 0 : i64, scratch_operands = 0 : i64, tpu.core_type = #tpu.core_type<tc>, window_params = [{transform_indices = @transform_0, window_bounds = array<i64: 16, 32>}, {transform_indices = @transform_1, window_bounds = array<i64: 16, 32>}, {transform_indices = @transform_2, window_bounds = array<i64: 16, 1>}, {transform_indices = @transform_3, window_bounds = array<i64: 8, 128>}]} {
    %c0 = arith.constant 0 : index
    %c0_0 = arith.constant 0 : index
    %0 = vector.load %arg1[%c0, %c0_0] : memref<16x32xf32, #tpu.memory_space<vmem>>, vector<16x32xf32>
    %c0_1 = arith.constant 0 : index
    %c0_2 = arith.constant 0 : index
    %1 = vector.load %arg2[%c0_1, %c0_2] : memref<16x32xf32, #tpu.memory_space<vmem>>, vector<16x32xf32>
    %cst = arith.constant dense<0xFF800000> : vector<16xf32>
    %2 = vector.multi_reduction <maximumf>, %0, %cst [1] : vector<16x32xf32> to vector<16xf32>
    %3 = vector.shape_cast %2 : vector<16xf32> to vector<16x1xf32>
    %4 = vector.broadcast %3 : vector<16x1xf32> to vector<16x32xf32>
    %5 = arith.subf %0, %4 : vector<16x32xf32>
    %6 = math.exp %5 : vector<16x32xf32>
    %cst_3 = arith.constant dense<0.000000e+00> : vector<16xf32>
    %7 = vector.multi_reduction <add>, %6, %cst_3 [1] : vector<16x32xf32> to vector<16xf32>
    %8 = vector.shape_cast %7 : vector<16xf32> to vector<16x1xf32>
    %9 = math.log %8 : vector<16x1xf32>
    %cst_4 = arith.constant dense<0.000000e+00> : vector<16xf32>
    %10 = vector.multi_reduction <add>, %1, %cst_4 [1] : vector<16x32xf32> to vector<16xf32>
    %11 = vector.shape_cast %10 : vector<16xf32> to vector<16x1xf32>
    %12 = arith.mulf %1, %5 : vector<16x32xf32>
    %cst_5 = arith.constant dense<0.000000e+00> : vector<16xf32>
    %13 = vector.multi_reduction <add>, %12, %cst_5 [1] : vector<16x32xf32> to vector<16xf32>
    %14 = vector.shape_cast %13 : vector<16xf32> to vector<16x1xf32>
    %15 = arith.mulf %9, %11 : vector<16x1xf32>
    %16 = arith.subf %15, %14 : vector<16x1xf32>
    %c0_6 = arith.constant 0 : index
    %c0_7 = arith.constant 0 : index
    %17 = vector.load %arg3[%c0_6, %c0_7] : memref<16x1xf32, #tpu.memory_space<vmem>>, vector<16x1xf32>
    %18 = arith.mulf %16, %17 : vector<16x1xf32>
    %19 = vector.shape_cast %18 : vector<16x1xf32> to vector<1x16x1xf32>
    %cst_8 = arith.constant dense<0.000000e+00> : vector<1xf32>
    %20 = vector.multi_reduction <add>, %19, %cst_8 [1, 2] : vector<1x16x1xf32> to vector<1xf32>
    %21 = vector.shape_cast %20 : vector<1xf32> to vector<1x1x1xf32>
    %22 = vector.extract %21[0, 0, 0] : f32 from vector<1x1x1xf32>
    %23 = tpu.iota {dimensions = array<i32: 0>} : vector<8x128xi32>
    %24 = vector.shape_cast %17 : vector<16x1xf32> to vector<1x16x1xf32>
    %cst_9 = arith.constant dense<0.000000e+00> : vector<1xf32>
    %25 = vector.multi_reduction <add>, %24, %cst_9 [1, 2] : vector<1x16x1xf32> to vector<1xf32>
    %26 = vector.shape_cast %25 : vector<1xf32> to vector<1x1x1xf32>
    %27 = vector.extract %26[0, 0, 0] : f32 from vector<1x1x1xf32>
    %c0_i32 = arith.constant 0 : i32
    %28 = vector.broadcast %c0_i32 : i32 to vector<8x128xi32>
    %29 = arith.cmpi eq, %23, %28 : vector<8x128xi32>
    %c1_i32 = arith.constant 1 : i32
    %30 = vector.broadcast %c1_i32 : i32 to vector<8x128xi32>
    %31 = arith.cmpi eq, %23, %30 : vector<8x128xi32>
    %cst_10 = arith.constant 0.000000e+00 : f32
    %32 = vector.broadcast %27 : f32 to vector<8x128xf32>
    %33 = vector.broadcast %cst_10 : f32 to vector<8x128xf32>
    %34 = arith.select %31, %32, %33 : vector<8x128xi1>, vector<8x128xf32>
    %35 = vector.broadcast %22 : f32 to vector<8x128xf32>
    %36 = arith.select %29, %35, %34 : vector<8x128xi1>, vector<8x128xf32>
    %c0_11 = arith.constant 0 : index
    %c0_12 = arith.constant 0 : index
    %37 = vector.load %arg4[%c0_11, %c0_12] : memref<8x128xf32, #tpu.memory_space<vmem>>, vector<8x128xf32>
    tpu.vector_store %arg4[%c0_11, %c0_12], %36 {strides = array<i32>} : memref<8x128xf32, #tpu.memory_space<vmem>>, vector<8x128xf32>,
    return
  }
  func.func @transform_0(%arg0: i32) -> (i32, i32) {
    %c0_i32 = arith.constant 0 : i32
    %c0_i32_0 = arith.constant 0 : i32
    return %arg0, %c0_i32 : i32, i32
  }
  func.func @transform_1(%arg0: i32) -> (i32, i32) {
    %c0_i32 = arith.constant 0 : i32
    %c0_i32_0 = arith.constant 0 : i32
    return %arg0, %c0_i32 : i32, i32
  }
  func.func @transform_2(%arg0: i32) -> (i32, i32) {
    %c0_i32 = arith.constant 0 : i32
    %c0_i32_0 = arith.constant 0 : i32
    return %arg0, %c0_i32 : i32, i32
  }
  func.func @transform_3(%arg0: i32) -> (i32, i32) {
    %c0_i32 = arith.constant 0 : i32
    %c0_i32_0 = arith.constant 0 : i32
    return %arg0, %c0_i32 : i32, i32
  }
}

</mosaic_0001>

<bundles_post_ra>
// kernel: tpu_custom_call.1
= control target key start
LH: loop header
LB: loop body
LE: loop exit
PB: predicated region body
PF: predicated region fallthrough
CT: control target
= control target key end

     0   :  { %8 = vsyncpa [#allocation3], 0  ;;  %s253_s0 = inlined_call_operand.vmem [shape: f32[16,32], index: 0, kind: input, shape index: {}]   ;;  %s254_s1 = inlined_call_operand.hbm [shape: f32[16,32], index: 1, kind: input, shape index: {}]   ;;  %s255_s2 = inlined_call_operand.vmem [shape: f32[16,1], index: 2, kind: input, shape index: {}]   ;;  %s256_s3 = inlined_call_operand.hbm [shape: f32[8,128], index: 3, kind: output, shape index: {}]  }
   0x1   :  { %9 = vsyncpa [#allocation4], 0  ;;  %s16_s14 = sshll.u32 %s254_s1, 4  ;;  %s199_s15 = smov [#allocation2]   ;;  %s17_s14 = int_to_ptr.hbm [resolvable:$true] %s16_s14 }
   0x2   :  { %s18_s16 = sshll.u32 %s199_s15, 4  ;;  %s200_s17 = smov 128   ;;  %s19_s16 = int_to_ptr.vmem [resolvable:$true] %s18_s16 }
   0x3   :  { %s201_s18 = smov 8  }
   0x4   :  { %24 = dma.hbm_to_vmem [thread:$0]  %s17_s14, 256, %s19_s16, [#allocation3], %s200_s17, %s200_s17, %s201_s18  }
   0x5   :  { %195 = dma.done.wait [#allocation3], 256  }
   0x6   :  { %196 = vsyncadd [#allocation3], 4294967040  ;;  %vm35_vm0 = vcmask 261120   ;;  %v31_v0 = vld [vmem:[%s253_s0] sm:$0xff]  ;;  %v32_v2 = vld [vmem:[%s253_s0 + $0x8] sm:$0xff]  ;;  %vm80_vm1 = vcmask 7168   ;;  %v93_v60 = vlaneseq }
   0x7   :  { %v36_v1 = vsel %vm35_vm0, %v31_v0, -inf  ;;  %v39_v3 = vsel %vm35_vm0, %v32_v2, -inf  ;;  %v33_v4 = vld [vmem:[#allocation2] sm:$0xff]  ;;  %v34_v6 = vld [vmem:[#allocation2 + $0x8] sm:$0xff]  ;;  %s121_s29 = sshll.u32 %s256_s3, 4  ;;  %s122_s29 = int_to_ptr.hbm [resolvable:$true] %s121_s29 }
   0x8   :  { %37 = vmax.xlane.f32.xlu0 %v36_v1  ;;  %v58_v5 = vsel %vm35_vm0, %v33_v4, 0.0  ;;  %v61_v7 = vsel %vm35_vm0, %v34_v6, 0.0  ;;  %v76_v22 = vld [vmem:[%s255_s2] sm:$0xff]  ;;  %v77_v23 = vld [vmem:[%s255_s2 + $0x8] sm:$0xff]  ;;  %v94_v61 = vshrl.u32 %v93_v60, 7  ;;  %s202_s2 = smov [#allocation5]  }
   0x9   :  { %59 = vadd.xlane.f32.xlu2 %v58_v5  ;;  %v95_v24 = vsel %vm80_vm1, %v76_v22, 0.0  ;;  %v96_v25 = vsel %vm80_vm1, %v77_v23, 0.0  ;;  %s119_s25 = sshll.u32 %s202_s2, 4  ;;  %s120_s25 = int_to_ptr.vmem [resolvable:$true] %s119_s25 }
   0xa   :  { %v97_v26 = vadd.f32 %v96_v25, %v95_v24  ;;  %vm108_vm2 = vcmp.eq.s32.totalorder %v94_v61, 1  ;;  %vm107_vm3 = vcmp.eq.s32.totalorder %v94_v61, 0 }
  0x10   :  { %40 = vmax.xlane.f32.xlu0 %v39_v3 }
  0x11   :  { %62 = vadd.xlane.f32.xlu2 %v61_v7 }
  0x7b   :  { %v38_v8 = vpop.xlane.xlu0 %37 }
  0x7c   :  { %v42_v9 = vsub.f32 %v31_v0, %v38_v8  ;;  %v60_v28 = vpop.xlane.xlu2 %59 }
  0x7e   :  { %v44_v10 = vmul.f32 1.442695, %v42_v9  ;;  %v64_v11 = vmul.f32 %v42_v9, %v33_v4 }
  0x80   :  { %139 = vpow2.f32 %v44_v10  ;;  %v66_v12 = vsel %vm35_vm0, %v64_v11, 0.0 }
  0x81   :  { %67 = vadd.xlane.f32.xlu0 %v66_v12 }
  0x83   :  { %v41_v13 = vpop.xlane.xlu0 %40 }
  0x84   :  { %v43_v14 = vsub.f32 %v32_v2, %v41_v13  ;;  %v63_v35 = vpop.xlane.xlu2 %62 }
  0x86   :  { %v140_v15 = vpop.eup %139  ;;  %v46_v16 = vmul.f32 1.442695, %v43_v14  ;;  %v65_v20 = vmul.f32 %v43_v14, %v34_v6 }
  0x87   :  { %v48_v17 = vsel %vm35_vm0, %v140_v15, 0.0 }
  0x88   :  { %141 = vpow2.f32 %v46_v16  ;;  %49 = vadd.xlane.f32.xlu1 %v48_v17  ;;  %v69_v21 = vsel %vm35_vm0, %v65_v20, 0.0 }
  0x89   :  { %98 = vadd.xlane.f32.xlu0 %v97_v26 }
  0x8e   :  { %v142_v18 = vpop.eup %141 }
  0x8f   :  { %v51_v19 = vsel %vm35_vm0, %v142_v18, 0.0 }
  0x90   :  { %52 = vadd.xlane.f32.xlu1 %v51_v19 }
  0x98   :  { %70 = vadd.xlane.f32.xlu1 %v69_v21 }
  0xf4   :  { %v68_v34 = vpop.xlane.xlu0 %67 }
  0xfb   :  { %v50_v27 = vpop.xlane.xlu1 %49 }
  0xfc   :  { %143 = vlog2.f32 %v50_v27  ;;  %v99_v46 = vpop.xlane.xlu0 %98 }
  0xfd   :  { %v100_v47 = vrot.slane %v99_v46, 4 }
  0xff   :  { %v101_v48 = vadd.f32 %v100_v47, %v99_v46 }
 0x101   :  { %v102_v49 = vrot.slane %v101_v48, 2 }
 0x102   :  { %v144_v29 = vpop.eup %143 }
 0x103   :  { %v55_v30 = vmul.f32 0.6931472, %v144_v29  ;;  %v53_v31 = vpop.xlane.xlu1 %52  ;;  %v103_v53 = vadd.f32 %v102_v49, %v101_v48 }
 0x104   :  { %145 = vlog2.f32 %v53_v31 }
 0x105   :  { %v72_v32 = vmul.f32 %v60_v28, %v55_v30  ;;  %v104_v56 = vrot.slane %v103_v53, 1 }
 0x107   :  { %v74_v37 = vsub.f32 %v72_v32, %v68_v34  ;;  %v105_v59 = vadd.f32 %v104_v56, %v103_v53 }
 0x109   :  { %v78_v41 = vmul.f32 %v76_v22, %v74_v37 }
 0x10a   :  { %v146_v33 = vpop.eup %145 }
 0x10b   :  { %v57_v36 = vmul.f32 0.6931472, %v146_v33  ;;  %v71_v39 = vpop.xlane.xlu1 %70  ;;  %v81_v43 = vsel %vm80_vm1, %v78_v41, 0.0 }
 0x10d   :  { %v73_v38 = vmul.f32 %v63_v35, %v57_v36 }
 0x10f   :  { %v75_v40 = vsub.f32 %v73_v38, %v71_v39 }
 0x111   :  { %v79_v42 = vmul.f32 %v77_v23, %v75_v40 }
 0x113   :  { %v82_v44 = vsel %vm80_vm1, %v79_v42, 0.0 }
 0x114   :  { %v83_v45 = vadd.f32 %v82_v44, %v81_v43 }
 0x116   :  { %84 = vadd.xlane.f32.xlu2 %v83_v45 }
 0x189   :  { %v85_v50 = vpop.xlane.xlu2 %84 }
 0x18a   :  { %v86_v51 = vrot.slane %v85_v50, 4 }
 0x18c   :  { %v87_v52 = vadd.f32 %v86_v51, %v85_v50 }
 0x18e   :  { %v88_v54 = vrot.slane %v87_v52, 2 }
 0x190   :  { %v89_v55 = vadd.f32 %v88_v54, %v87_v52 }
 0x192   :  { %v90_v57 = vrot.slane %v89_v55, 1 }
 0x194   :  { %v91_v58 = vadd.f32 %v90_v57, %v89_v55 }
 0x196   :  { %131 = vpush %v91_v58 }
 0x197   :  { %133 = vpush %v105_v59 }
 0x1c7   :  { %s132_s26 = spop %131 }
 0x1c8   :  { %v111_v62 = vstv %s132_s26  ;;  %s134_s30 = spop %133 }
 0x1c9   :  { %v109_v63 = vstv %s134_s30 }
 0x1ca   :  { %v110_v0 = vsel %vm108_vm2, %v109_v63, 0.0 }
 0x1cb   :  { %v112_v1 = vsel %vm107_vm3, %v111_v62, %v110_v0 }
 0x1cc   :  { %113 = vst [vmem:[#allocation5] sm:$0xff] %v112_v1 }
 0x1cd   :  { %124 = dma.vmem_to_hbm [thread:$0]  %s120_s25, 128, %s122_s29, [#allocation4]  }
 0x1ce   :  { %197 = dma.done.wait [#allocation4], 128  }
 0x1cf   :  { %198 = vsyncadd [#allocation4], 4294967168 }
 0x1d0   :  { %129 = vsyncpa [#allocation3], 1 }
 0x1d1   :  { %130 = vsyncpa [#allocation4], 1 }

</bundles_post_ra>
